<compile_context>
chip_gen: v7x
topology: tpu7x:2x2x1
jax: 0.10.0
libtpu: 0.0.40
codegen_flags: <defaults>
</compile_context>

<pallas_src>
import jax
import jax.numpy as jnp
import numpy as np
from jax import lax
from jax.experimental import pallas as pl
from jax.experimental.pallas import tpu as pltpu

K_RAW = 5 * 5 * 3          # 75  (ky, kx, cin) im2col depth
K_BIAS = K_RAW             # column 75 carries the folded bias
K_PAD = 128                # K padded to a full lane width (unmasked vld)
C_OUT = 256                # lane-dense output channels


def fused_gemm_kernel(patches_ref, w_ref, out_ref):
    # Single folded GEMM (bias already folded into K row 75), then relu6 - 1.1.
    y = jnp.dot(patches_ref[...], w_ref[...],
                preferred_element_type=jnp.float32)
    out_ref[...] = (jnp.clip(y, 0.0, 6.0) - 1.1).astype(out_ref.dtype)


def prepare_params(w1_hwio, b1, w2, b2):
    """Fold conv1 (as GEMM) + 1x1 conv2 + biases into a single (K_PAD, C_OUT)
    weight.  Row 75 holds the folded bias; rows 76..127 are zero.  Done once,
    outside the jitted forward."""
    kh, kw, cin, c1 = w1_hwio.shape                        # (5, 5, 3, 128)
    c2 = w2.shape[1]                                       # 256
    kdim = kh * kw * cin                                   # 75
    w1_flat = w1_hwio.reshape(kdim, c1)
    w_fold = jnp.dot(w1_flat, w2, preferred_element_type=jnp.float32)  # (75, 256)
    b_fold = jnp.dot(b1, w2, preferred_element_type=jnp.float32) + b2  # (256,)
    w_aug = jnp.concatenate([w_fold, b_fold[None, :]], axis=0)         # (76, 256)
    w_pad = jnp.pad(w_aug, ((0, K_PAD - (kdim + 1)), (0, 0)))          # (128, 256)
    return w_pad.astype(jnp.float32)


def _extract_patches(x_nhwc, kh, kw, stride, pad):
    """im2col with symmetric padding.  Inner order (ky, kx, cin) matches the
    HWIO weight flatten order.  Runs under jit so the slice/concat fuses."""
    n, h, w, c = x_nhwc.shape
    xp = jnp.pad(x_nhwc, ((0, 0), (pad, pad), (pad, pad), (0, 0)))
    ho = (h + 2 * pad - kh) // stride + 1
    wo = (w + 2 * pad - kw) // stride + 1
    cols = []
    for ky in range(kh):
        for kx in range(kw):
            sl = xp[:, ky: ky + (ho - 1) * stride + 1: stride,
                       kx: kx + (wo - 1) * stride + 1: stride, :]
            cols.append(sl)
    patches = jnp.concatenate(cols, axis=-1)               # (N, Ho, Wo, 75)
    return patches.reshape(n * ho * wo, kh * kw * c), ho, wo


def _pick_tm(m):
    """Largest tile in {512, 256, 128} that still leaves >= 2 grid steps
    (so v7x's second TensorCore gets work); fall back to 128 for tiny M."""
    for tm in (512, 256, 128):
        if m >= 2 * tm:
            return tm
    return 128


@jax.jit
def model_forward(x_nchw, w_fold_pad):
    """x_nchw: (N, 3, H, W) f32. Returns (N, 256, Ho, Wo) f32."""
    n = x_nchw.shape[0]
    c2 = w_fold_pad.shape[1]

    x_nhwc = jnp.transpose(x_nchw, (0, 2, 3, 1))
    patches, ho, wo = _extract_patches(x_nhwc, kh=5, kw=5, stride=2, pad=1)

    m, kdim = patches.shape                                # kdim == 75
    tm = _pick_tm(m)
    m_pad = ((m + tm - 1) // tm) * tm

    # Append the bias column (1.0) then pad M -> m_pad and K -> K_PAD in one
    # fused pad.  M-padding rows have 0 in the bias column, so they just
    # produce -1.1 and are discarded by the out[:m] slice below.
    ones_col = jnp.ones((m, 1), dtype=patches.dtype)
    patches_aug = jnp.concatenate([patches, ones_col], axis=1)          # (m, 76)
    patches_p = jnp.pad(patches_aug,
                        ((0, m_pad - m), (0, K_PAD - (kdim + 1))))      # (m_pad, 128)

    cost = pl.CostEstimate(
        flops=2 * m_pad * K_PAD * c2,
        transcendentals=0,
        bytes_accessed=(m_pad * K_PAD + K_PAD * c2 + m_pad * c2) * 4,
    )

    out = pl.pallas_call(
        fused_gemm_kernel,
        out_shape=jax.ShapeDtypeStruct((m_pad, c2), jnp.float32),
        grid=(m_pad // tm,),
        in_specs=[
            pl.BlockSpec((tm, K_PAD), lambda i: (i, 0)),    # patches tile
            pl.BlockSpec((K_PAD, c2), lambda i: (0, 0)),    # folded W (resident)
        ],
        out_specs=pl.BlockSpec((tm, c2), lambda i: (i, 0)),
        compiler_params=pltpu.CompilerParams(
            dimension_semantics=("parallel",)),
        cost_estimate=cost,
    )(patches_p, w_fold_pad)

    out = out[:m].reshape(n, ho, wo, c2)                    # NHWC
    # NOTE: if the consumer accepts NHWC, this transpose (an extra HBM pass)
    # can be dropped; kept to match the PyTorch module's NCHW output.
    return jnp.transpose(out, (0, 3, 1, 2))                 # NCHW


def _reference(x_nchw, w1_hwio, b1, w2, b2):
    x_nhwc = jnp.transpose(x_nchw, (0, 2, 3, 1))
    y1 = lax.conv_general_dilated(
        x_nhwc, w1_hwio, window_strides=(2, 2), padding=[(1, 1), (1, 1)],
        dimension_numbers=("NHWC", "HWIO", "NHWC")) + b1
    y2 = jnp.einsum("nhwc,cd->nhwd", y1, w2) + b2
    y3 = jnp.clip(y2, 0.0, 6.0) - 1.1
    return jnp.transpose(y3, (0, 3, 1, 2))


if __name__ == "__main__":
    key = jax.random.PRNGKey(0)
    k_x, k_w1, k_b1, k_w2, k_b2 = jax.random.split(key, 5)

    # Small shapes consistent with the module: batch=2, Cin=3, spatial=16.
    x = jax.random.normal(k_x, (2, 3, 16, 16), dtype=jnp.float32)

    # Deterministic synthetic parameters (shapes from the module __init__).
    # conv1 weight in HWIO: (5, 5, 3, 128); conv2 (1x1) weight as (128, 256).
    w1 = jax.random.normal(k_w1, (5, 5, 3, 128), dtype=jnp.float32) * 0.05
    b1 = jax.random.normal(k_b1, (128,), dtype=jnp.float32) * 0.05
    w2 = jax.random.normal(k_w2, (128, 256), dtype=jnp.float32) * 0.05
    b2 = jax.random.normal(k_b2, (256,), dtype=jnp.float32) * 0.05

    # One-time parameter fold (outside the jitted forward).
    w_fold_pad = jax.block_until_ready(prepare_params(w1, b1, w2, b2))

    out = jax.block_until_ready(model_forward(x, w_fold_pad))

    ref = jax.block_until_ready(_reference(x, w1, b1, w2, b2))
    np.testing.assert_allclose(np.asarray(out), np.asarray(ref),
                               rtol=1e-4, atol=1e-4)
    assert out.shape == (2, 256, 7, 7), out.shape
    print("KERNEL_OK")
</pallas_src>

<mosaic_0001>
module attributes {stable_mosaic.version = 11 : i64} {
  func.func @fused_gemm_kernel(%arg0: i32, %arg1: memref<128x128xf32, #tpu.memory_space<vmem>>, %arg2: memref<128x256xf32, #tpu.memory_space<vmem>>, %arg3: memref<128x256xf32, #tpu.memory_space<vmem>>) attributes {dimension_semantics = [#tpu.dimension_semantics<parallel>], iteration_bounds = array<i64: 1>, scalar_prefetch = 0 : i64, scratch_operands = 0 : i64, tpu.core_type = #tpu.core_type<tc>, window_params = [{transform_indices = @transform_0, window_bounds = array<i64: 128, 128>}, {pipeline_mode = #tpu.pipeline_mode<synchronous>, transform_indices = @transform_1, window_bounds = array<i64: 128, 256>}, {transform_indices = @transform_2, window_bounds = array<i64: 128, 256>}]} {
    %c0 = arith.constant 0 : index
    %c0_0 = arith.constant 0 : index
    %0 = vector.load %arg1[%c0, %c0_0] : memref<128x128xf32, #tpu.memory_space<vmem>>, vector<128x128xf32>
    %c0_1 = arith.constant 0 : index
    %c0_2 = arith.constant 0 : index
    %1 = vector.load %arg2[%c0_1, %c0_2] : memref<128x256xf32, #tpu.memory_space<vmem>>, vector<128x256xf32>
    %cst = arith.constant dense<0.000000e+00> : vector<128x256xf32>
    %2 = tpu.matmul %0, %1, %cst {dimension_numbers = #tpu.dot_dimension_numbers<[1], [0], [0], [1], [0, 0, 1, 1], [], []>} : vector<128x128xf32>, vector<128x256xf32>, vector<128x256xf32> -> vector<128x256xf32>
    %cst_3 = arith.constant 0.000000e+00 : f32
    %cst_4 = arith.constant 6.000000e+00 : f32
    %3 = vector.broadcast %cst_3 : f32 to vector<128x256xf32>
    %4 = arith.maximumf %3, %2 : vector<128x256xf32>
    %5 = vector.broadcast %cst_4 : f32 to vector<128x256xf32>
    %6 = arith.minimumf %5, %4 : vector<128x256xf32>
    %cst_5 = arith.constant 1.100000e+00 : f32
    %7 = vector.broadcast %cst_5 : f32 to vector<128x256xf32>
    %8 = arith.subf %6, %7 : vector<128x256xf32>
    %c0_6 = arith.constant 0 : index
    %c0_7 = arith.constant 0 : index
    %9 = vector.load %arg3[%c0_6, %c0_7] : memref<128x256xf32, #tpu.memory_space<vmem>>, vector<128x256xf32>
    tpu.vector_store %arg3[%c0_6, %c0_7], %8 {strides = array<i32>} : memref<128x256xf32, #tpu.memory_space<vmem>>, vector<128x256xf32>,
    return
  }
  func.func @transform_0(%arg0: i32) -> (i32, i32) {
    %c0_i32 = arith.constant 0 : i32
    %c0_i32_0 = arith.constant 0 : i32
    return %arg0, %c0_i32 : i32, i32
  }
  func.func @transform_1(%arg0: i32) -> (i32, i32) {
    %c0_i32 = arith.constant 0 : i32
    %c0_i32_0 = arith.constant 0 : i32
    %c0_i32_1 = arith.constant 0 : i32
    return %c0_i32, %c0_i32_0 : i32, i32
  }
  func.func @transform_2(%arg0: i32) -> (i32, i32) {
    %c0_i32 = arith.constant 0 : i32
    %c0_i32_0 = arith.constant 0 : i32
    return %arg0, %c0_i32 : i32, i32
  }
}

</mosaic_0001>

<bundles_post_ra>
// kernel: model_forward.1
= control target key start
LH: loop header
LB: loop body
LE: loop exit
PB: predicated region body
PF: predicated region fallthrough
CT: control target
= control target key end

     0   :  { %v433_v3 = vmov 0.0   ;;  %s705_s1 = inlined_call_operand.vmem [shape: f32[128,256], index: 1, kind: input, shape index: {}]   ;;  %s706_s0 = inlined_call_operand.vmem [shape: f32[128,128], index: 0, kind: input, shape index: {}]   ;;  %s707_s2 = inlined_call_operand.vmem [shape: f32[128,256], index: 2, kind: output, shape index: {}]  }
   0x1   :  { %v28_v0 = vld [vmem:[%s705_s1 + $0x8] sm:$0xff]  ;;  %v30_v1 = vld [vmem:[%s705_s1 + $0x18] sm:$0xff]  ;;  %v27_v2 = vld [vmem:[%s705_s1] sm:$0xff]  ;;  %123 = vmatprep.mubr.f32.mxu0 %v433_v3  ;;  %171 = vmatprep.mubr.f32.mxu1 %v433_v3 }
   0x2   :  { %v384_v4 = vpack.c.bf16 %v30_v1, %v28_v0  ;;  %v29_v5 = vld [vmem:[%s705_s1 + $0x10] sm:$0xff]  ;;  %v32_v6 = vld [vmem:[%s705_s1 + $0x28] sm:$0xff]  ;;  %v34_v7 = vld [vmem:[%s705_s1 + $0x38] sm:$0xff] }
   0x3   :  { %v386_v8 = vpack.c.bf16 %v29_v5, %v27_v2  ;;  %v388_v9 = vpack.c.bf16 %v34_v7, %v32_v6  ;;  %v31_v10 = vld [vmem:[%s705_s1 + $0x20] sm:$0xff]  ;;  %v33_v11 = vld [vmem:[%s705_s1 + $0x30] sm:$0xff]  ;;  %v36_v12 = vld [vmem:[%s705_s1 + $0x48] sm:$0xff] }
   0x4   :  { %385 = vmatprep.subr.bf16.mxu0 %v384_v4  ;;  %416 = vmatprep.subr.bf16.mxu1 %v384_v4  ;;  %v38_v13 = vld [vmem:[%s705_s1 + $0x58] sm:$0xff]  ;;  %v390_v14 = vpack.c.bf16 %v33_v11, %v31_v10  ;;  %v35_v16 = vld [vmem:[%s705_s1 + $0x40] sm:$0xff]  ;;  %v37_v17 = vld [vmem:[%s705_s1 + $0x50] sm:$0xff] }
   0x5   :  { %387 = vmatpush1.bf16.msra.mxu0 %v386_v8  ;;  %424 = vmatpush1.bf16.msra.mxu1 %v386_v8  ;;  %v392_v15 = vpack.c.bf16 %v38_v13, %v36_v12  ;;  %v40_v18 = vld [vmem:[%s705_s1 + $0x68] sm:$0xff]  ;;  %v42_v19 = vld [vmem:[%s705_s1 + $0x78] sm:$0xff]  ;;  %v394_v20 = vpack.c.bf16 %v37_v17, %v35_v16  ;;  %v39_v22 = vld [vmem:[%s705_s1 + $0x60] sm:$0xff] }
   0x6   :  { %389 = vmatprep.subr.bf16.mxu0 %v388_v9  ;;  %417 = vmatprep.subr.bf16.mxu1 %v388_v9  ;;  %v396_v21 = vpack.c.bf16 %v42_v19, %v40_v18  ;;  %v41_v23 = vld [vmem:[%s705_s1 + $0x70] sm:$0xff]  ;;  %v44_v24 = vld [vmem:[%s705_s1 + $0x88] sm:$0xff]  ;;  %v46_v25 = vld [vmem:[%s705_s1 + $0x98] sm:$0xff] }
   0x7   :  { %v398_v26 = vpack.c.bf16 %v41_v23, %v39_v22  ;;  %v400_v27 = vpack.c.bf16 %v46_v25, %v44_v24  ;;  %v43_v28 = vld [vmem:[%s705_s1 + $0x80] sm:$0xff]  ;;  %v45_v29 = vld [vmem:[%s705_s1 + $0x90] sm:$0xff]  ;;  %v48_v30 = vld [vmem:[%s705_s1 + $0xa8] sm:$0xff] }
   0x8   :  { %v50_v31 = vld [vmem:[%s705_s1 + $0xb8] sm:$0xff]  ;;  %v402_v32 = vpack.c.bf16 %v45_v29, %v43_v28  ;;  %v47_v34 = vld [vmem:[%s705_s1 + $0xa0] sm:$0xff]  ;;  %v49_v35 = vld [vmem:[%s705_s1 + $0xb0] sm:$0xff] }
   0x9   :  { %391 = vmatpush1.bf16.msra.mxu0 %v390_v14  ;;  %425 = vmatpush1.bf16.msra.mxu1 %v390_v14  ;;  %v404_v33 = vpack.c.bf16 %v50_v31, %v48_v30  ;;  %v52_v36 = vld [vmem:[%s705_s1 + $0xc8] sm:$0xff]  ;;  %v54_v37 = vld [vmem:[%s705_s1 + $0xd8] sm:$0xff]  ;;  %v406_v38 = vpack.c.bf16 %v49_v35, %v47_v34  ;;  %v51_v40 = vld [vmem:[%s705_s1 + $0xc0] sm:$0xff] }
   0xa   :  { %393 = vmatprep.subr.bf16.mxu0 %v392_v15  ;;  %418 = vmatprep.subr.bf16.mxu1 %v392_v15  ;;  %v408_v39 = vpack.c.bf16 %v54_v37, %v52_v36  ;;  %v53_v41 = vld [vmem:[%s705_s1 + $0xd0] sm:$0xff]  ;;  %v56_v42 = vld [vmem:[%s705_s1 + $0xe8] sm:$0xff]  ;;  %v58_v43 = vld [vmem:[%s705_s1 + $0xf8] sm:$0xff] }
   0xb   :  { %v410_v44 = vpack.c.bf16 %v53_v41, %v51_v40  ;;  %v412_v45 = vpack.c.bf16 %v58_v43, %v56_v42  ;;  %v55_v46 = vld [vmem:[%s705_s1 + $0xe0] sm:$0xff]  ;;  %v57_v47 = vld [vmem:[%s705_s1 + $0xf0] sm:$0xff]  ;;  %v12_v51 = vld [vmem:[%s706_s0 + $0x8] sm:$0xff] }
   0xc   :  { %v414_v48 = vpack.c.bf16 %v57_v47, %v55_v46  ;;  %v11_v49 = vld [vmem:[%s706_s0] sm:$0xff]  ;;  %v20_v52 = vld [vmem:[%s706_s0 + $0x48] sm:$0xff]  ;;  %v13_v53 = vld [vmem:[%s706_s0 + $0x10] sm:$0xff] }
   0xd   :  { %395 = vmatpush1.bf16.msra.mxu0 %v394_v20  ;;  %426 = vmatpush1.bf16.msra.mxu1 %v394_v20  ;;  %v19_v50 = vld [vmem:[%s706_s0 + $0x40] sm:$0xff]  ;;  %v21_v54 = vld [vmem:[%s706_s0 + $0x50] sm:$0xff]  ;;  %v14_v55 = vld [vmem:[%s706_s0 + $0x18] sm:$0xff] }
   0xe   :  { %397 = vmatprep.subr.bf16.mxu0 %v396_v21  ;;  %419 = vmatprep.subr.bf16.mxu1 %v396_v21  ;;  %v22_v56 = vld [vmem:[%s706_s0 + $0x58] sm:$0xff]  ;;  %v15_v57 = vld [vmem:[%s706_s0 + $0x20] sm:$0xff]  ;;  %v16_v59 = vld [vmem:[%s706_s0 + $0x28] sm:$0xff] }
   0xf   :  { %v23_v58 = vld [vmem:[%s706_s0 + $0x60] sm:$0xff]  ;;  %v24_v60 = vld [vmem:[%s706_s0 + $0x68] sm:$0xff]  ;;  %v17_v61 = vld [vmem:[%s706_s0 + $0x30] sm:$0xff] }
  0x10   :  { %v25_v62 = vld [vmem:[%s706_s0 + $0x70] sm:$0xff]  ;;  %v18_v63 = vld [vmem:[%s706_s0 + $0x38] sm:$0xff] }
  0x11   :  { %399 = vmatpush1.bf16.msra.mxu0 %v398_v26  ;;  %427 = vmatpush1.bf16.msra.mxu1 %v398_v26  ;;  %v26_v0 = vld [vmem:[%s706_s0 + $0x78] sm:$0xff] }
  0x12   :  { %401 = vmatprep.subr.bf16.mxu0 %v400_v27  ;;  %420 = vmatprep.subr.bf16.mxu1 %v400_v27 }
  0x15   :  { %403 = vmatpush1.bf16.msra.mxu0 %v402_v32  ;;  %428 = vmatpush1.bf16.msra.mxu1 %v402_v32 }
  0x16   :  { %405 = vmatprep.subr.bf16.mxu0 %v404_v33  ;;  %421 = vmatprep.subr.bf16.mxu1 %v404_v33 }
  0x19   :  { %407 = vmatpush1.bf16.msra.mxu0 %v406_v38  ;;  %429 = vmatpush1.bf16.msra.mxu1 %v406_v38 }
  0x1a   :  { %409 = vmatprep.subr.bf16.mxu0 %v408_v39  ;;  %422 = vmatprep.subr.bf16.mxu1 %v408_v39 }
  0x1d   :  { %411 = vmatpush1.bf16.msra.mxu0 %v410_v44  ;;  %430 = vmatpush1.bf16.msra.mxu1 %v410_v44 }
  0x1e   :  { %413 = vmatprep.subr.bf16.mxu0 %v412_v45  ;;  %423 = vmatprep.subr.bf16.mxu1 %v412_v45 }
  0x21   :  { %415 = vmatpush1.bf16.msra.mxu0 %v414_v48  ;;  %431 = vmatpush1.bf16.msra.mxu1 %v414_v48 }
  0x24   :  { %124 = vmatmul.mubr.f32.vlgmr.msra.gmra.mrb[0].mxu0 %v11_v49  ;;  %172 = vmatmul.mubr.f32.vlgmr.msra.gmra.mrb[0].mxu1 %v19_v50 }
  0x25   :  { %129 = vmatprep.mubr.f32.mxu0 %v433_v3  ;;  %177 = vmatprep.mubr.f32.mxu1 %v433_v3 }
  0x28   :  { %130 = vmatmul.mubr.f32.gmra.mrb[2].mxu0 %v12_v51  ;;  %178 = vmatmul.mubr.f32.gmra.mrb[2].mxu1 %v20_v52 }
  0x29   :  { %135 = vmatprep.mubr.f32.mxu0 %v433_v3  ;;  %183 = vmatprep.mubr.f32.mxu1 %v433_v3 }
  0x2c   :  { %136 = vmatmul.mubr.f32.gmra.mrb[4].mxu0 %v13_v53  ;;  %184 = vmatmul.mubr.f32.gmra.mrb[4].mxu1 %v21_v54 }
  0x2d   :  { %141 = vmatprep.mubr.f32.mxu0 %v433_v3  ;;  %189 = vmatprep.mubr.f32.mxu1 %v433_v3 }
  0x30   :  { %142 = vmatmul.mubr.f32.gmra.mrb[6].mxu0 %v14_v55  ;;  %190 = vmatmul.mubr.f32.gmra.mrb[6].mxu1 %v22_v56 }
  0x31   :  { %147 = vmatprep.mubr.f32.mxu0 %v433_v3  ;;  %195 = vmatprep.mubr.f32.mxu1 %v433_v3 }
  0x34   :  { %148 = vmatmul.mubr.f32.gmra.mrb[8].mxu0 %v15_v57  ;;  %196 = vmatmul.mubr.f32.gmra.mrb[8].mxu1 %v23_v58 }
  0x35   :  { %153 = vmatprep.mubr.f32.mxu0 %v433_v3  ;;  %201 = vmatprep.mubr.f32.mxu1 %v433_v3 }
  0x38   :  { %154 = vmatmul.mubr.f32.gmra.mrb[10].mxu0 %v16_v59  ;;  %202 = vmatmul.mubr.f32.gmra.mrb[10].mxu1 %v24_v60 }
  0x39   :  { %159 = vmatprep.mubr.f32.mxu0 %v433_v3  ;;  %207 = vmatprep.mubr.f32.mxu1 %v433_v3 }
  0x3c   :  { %160 = vmatmul.mubr.f32.gmra.mrb[12].mxu0 %v17_v61  ;;  %208 = vmatmul.mubr.f32.gmra.mrb[12].mxu1 %v25_v62 }
  0x3d   :  { %165 = vmatprep.mubr.f32.mxu0 %v433_v3  ;;  %213 = vmatprep.mubr.f32.mxu1 %v433_v3 }
  0x40   :  { %166 = vmatmul.mubr.f32.gmra.mrb[14].mxu0 %v18_v63  ;;  %214 = vmatmul.mubr.f32.gmra.mrb[14].mxu1 %v26_v0 }
  0xf7   :  { %v125_v1 = vpop.f32.mrb[0].mxu0  ;;  %v173_v2 = vpop.f32.mrb[0].mxu1 }
  0xf8   :  { %v220_v4 = vmax.f32 %v125_v1, 0.0  ;;  %v236_v5 = vmax.f32 %v173_v2, 0.0  ;;  %v127_v6 = vpop.f32.mrb[1].mxu0  ;;  %v175_v7 = vpop.f32.mrb[1].mxu1 }
  0xf9   :  { %v221_v8 = vmax.f32 %v127_v6, 0.0  ;;  %v237_v9 = vmax.f32 %v175_v7, 0.0 }
  0xfa   :  { %v252_v10 = vmin.f32 %v220_v4, 6.0  ;;  %v268_v3 = vmin.f32 %v236_v5, 6.0 }
  0xfb   :  { %v253_v11 = vmin.f32 %v221_v8, 6.0  ;;  %v269_v12 = vmin.f32 %v237_v9, 6.0  ;;  %v131_v13 = vpop.f32.mrb[2].mxu0  ;;  %v179_v14 = vpop.f32.mrb[2].mxu1 }
  0xfc   :  { %v352_v15 = vadd.f32 -1.1, %v252_v10  ;;  %v368_v16 = vadd.f32 -1.1, %v268_v3  ;;  %v222_v17 = vmax.f32 %v131_v13, 0.0  ;;  %v238_v18 = vmax.f32 %v179_v14, 0.0 }
  0xfd   :  { %v353_v19 = vadd.f32 -1.1, %v253_v11  ;;  %v369_v20 = vadd.f32 -1.1, %v269_v12  ;;  %v133_v21 = vpop.f32.mrb[3].mxu0  ;;  %v181_v22 = vpop.f32.mrb[3].mxu1 }
  0xfe   :  { %316 = vst [vmem:[%s707_s2] sm:$0xff] %v352_v15  ;;  %332 = vst [vmem:[%s707_s2 + $0x80] sm:$0xff] %v368_v16  ;;  %v254_v23 = vmin.f32 %v222_v17, 6.0  ;;  %v270_v24 = vmin.f32 %v238_v18, 6.0  ;;  %v223_v25 = vmax.f32 %v133_v21, 0.0  ;;  %v239_v26 = vmax.f32 %v181_v22, 0.0 }
  0xff   :  { %317 = vst [vmem:[%s707_s2 + $0x8] sm:$0xff] %v353_v19  ;;  %333 = vst [vmem:[%s707_s2 + $0x88] sm:$0xff] %v369_v20  ;;  %v137_v27 = vpop.f32.mrb[4].mxu0  ;;  %v185_v28 = vpop.f32.mrb[4].mxu1 }
 0x100   :  { %v354_v29 = vadd.f32 -1.1, %v254_v23  ;;  %v370_v30 = vadd.f32 -1.1, %v270_v24  ;;  %v255_v31 = vmin.f32 %v223_v25, 6.0  ;;  %v271_v32 = vmin.f32 %v239_v26, 6.0 }
 0x101   :  { %v224_v33 = vmax.f32 %v137_v27, 0.0  ;;  %v240_v34 = vmax.f32 %v185_v28, 0.0  ;;  %v139_v35 = vpop.f32.mrb[5].mxu0  ;;  %v187_v36 = vpop.f32.mrb[5].mxu1 }
 0x102   :  { %318 = vst [vmem:[%s707_s2 + $0x10] sm:$0xff] %v354_v29  ;;  %334 = vst [vmem:[%s707_s2 + $0x90] sm:$0xff] %v370_v30  ;;  %v355_v37 = vadd.f32 -1.1, %v255_v31  ;;  %v371_v38 = vadd.f32 -1.1, %v271_v32 }
 0x103   :  { %v225_v39 = vmax.f32 %v139_v35, 0.0  ;;  %v241_v40 = vmax.f32 %v187_v36, 0.0  ;;  %v256_v41 = vmin.f32 %v224_v33, 6.0  ;;  %v272_v42 = vmin.f32 %v240_v34, 6.0  ;;  %v143_v43 = vpop.f32.mrb[6].mxu0  ;;  %v191_v44 = vpop.f32.mrb[6].mxu1 }
 0x104   :  { %319 = vst [vmem:[%s707_s2 + $0x18] sm:$0xff] %v355_v37  ;;  %335 = vst [vmem:[%s707_s2 + $0x98] sm:$0xff] %v371_v38  ;;  %v226_v47 = vmax.f32 %v143_v43, 0.0  ;;  %v242_v48 = vmax.f32 %v191_v44, 0.0  ;;  %v145_v49 = vpop.f32.mrb[7].mxu0  ;;  %v193_v50 = vpop.f32.mrb[7].mxu1 }
 0x105   :  { %v257_v45 = vmin.f32 %v225_v39, 6.0  ;;  %v273_v46 = vmin.f32 %v241_v40, 6.0  ;;  %v356_v51 = vadd.f32 -1.1, %v256_v41  ;;  %v372_v52 = vadd.f32 -1.1, %v272_v42 }
 0x106   :  { %v227_v53 = vmax.f32 %v145_v49, 0.0  ;;  %v243_v54 = vmax.f32 %v193_v50, 0.0  ;;  %v258_v57 = vmin.f32 %v226_v47, 6.0  ;;  %v274_v58 = vmin.f32 %v242_v48, 6.0 }
 0x107   :  { %v357_v55 = vadd.f32 -1.1, %v257_v45  ;;  %v373_v56 = vadd.f32 -1.1, %v273_v46  ;;  %320 = vst [vmem:[%s707_s2 + $0x20] sm:$0xff] %v356_v51  ;;  %336 = vst [vmem:[%s707_s2 + $0xa0] sm:$0xff] %v372_v52 }
 0x108   :  { %v259_v59 = vmin.f32 %v227_v53, 6.0  ;;  %v275_v60 = vmin.f32 %v243_v54, 6.0  ;;  %v149_v61 = vpop.f32.mrb[8].mxu0  ;;  %v197_v62 = vpop.f32.mrb[8].mxu1  ;;  %v358_v63 = vadd.f32 -1.1, %v258_v57 }
 0x109   :  { %321 = vst [vmem:[%s707_s2 + $0x28] sm:$0xff] %v357_v55  ;;  %337 = vst [vmem:[%s707_s2 + $0xa8] sm:$0xff] %v373_v56  ;;  %v374_v0 = vadd.f32 -1.1, %v274_v58  ;;  %v228_v1 = vmax.f32 %v149_v61, 0.0  ;;  %v244_v2 = vmax.f32 %v197_v62, 0.0 }
 0x10a   :  { %v359_v4 = vadd.f32 -1.1, %v259_v59  ;;  %v375_v5 = vadd.f32 -1.1, %v275_v60  ;;  %v151_v6 = vpop.f32.mrb[9].mxu0  ;;  %v199_v7 = vpop.f32.mrb[9].mxu1 }
 0x10b   :  { %322 = vst [vmem:[%s707_s2 + $0x30] sm:$0xff] %v358_v63  ;;  %338 = vst [vmem:[%s707_s2 + $0xb0] sm:$0xff] %v374_v0  ;;  %v260_v8 = vmin.f32 %v228_v1, 6.0  ;;  %v276_v9 = vmin.f32 %v244_v2, 6.0  ;;  %v229_v10 = vmax.f32 %v151_v6, 0.0  ;;  %v245_v3 = vmax.f32 %v199_v7, 0.0 }
 0x10c   :  { %323 = vst [vmem:[%s707_s2 + $0x38] sm:$0xff] %v359_v4  ;;  %339 = vst [vmem:[%s707_s2 + $0xb8] sm:$0xff] %v375_v5  ;;  %v155_v11 = vpop.f32.mrb[10].mxu0  ;;  %v203_v12 = vpop.f32.mrb[10].mxu1 }
 0x10d   :  { %v360_v13 = vadd.f32 -1.1, %v260_v8  ;;  %v376_v14 = vadd.f32 -1.1, %v276_v9  ;;  %v261_v15 = vmin.f32 %v229_v10, 6.0  ;;  %v277_v16 = vmin.f32 %v245_v3, 6.0 }
 0x10e   :  { %v230_v17 = vmax.f32 %v155_v11, 0.0  ;;  %v246_v18 = vmax.f32 %v203_v12, 0.0  ;;  %v157_v19 = vpop.f32.mrb[11].mxu0  ;;  %v205_v20 = vpop.f32.mrb[11].mxu1 }
 0x10f   :  { %324 = vst [vmem:[%s707_s2 + $0x40] sm:$0xff] %v360_v13  ;;  %340 = vst [vmem:[%s707_s2 + $0xc0] sm:$0xff] %v376_v14  ;;  %v361_v21 = vadd.f32 -1.1, %v261_v15  ;;  %v377_v22 = vadd.f32 -1.1, %v277_v16 }
 0x110   :  { %v231_v23 = vmax.f32 %v157_v19, 0.0  ;;  %v247_v24 = vmax.f32 %v205_v20, 0.0  ;;  %v262_v25 = vmin.f32 %v230_v17, 6.0  ;;  %v278_v26 = vmin.f32 %v246_v18, 6.0  ;;  %v161_v27 = vpop.f32.mrb[12].mxu0  ;;  %v209_v28 = vpop.f32.mrb[12].mxu1 }
 0x111   :  { %325 = vst [vmem:[%s707_s2 + $0x48] sm:$0xff] %v361_v21  ;;  %341 = vst [vmem:[%s707_s2 + $0xc8] sm:$0xff] %v377_v22  ;;  %v232_v31 = vmax.f32 %v161_v27, 0.0  ;;  %v248_v32 = vmax.f32 %v209_v28, 0.0  ;;  %v163_v33 = vpop.f32.mrb[13].mxu0  ;;  %v211_v34 = vpop.f32.mrb[13].mxu1 }
 0x112   :  { %v263_v29 = vmin.f32 %v231_v23, 6.0  ;;  %v279_v30 = vmin.f32 %v247_v24, 6.0  ;;  %v362_v35 = vadd.f32 -1.1, %v262_v25  ;;  %v378_v36 = vadd.f32 -1.1, %v278_v26 }
 0x113   :  { %v233_v37 = vmax.f32 %v163_v33, 0.0  ;;  %v249_v38 = vmax.f32 %v211_v34, 0.0  ;;  %v264_v41 = vmin.f32 %v232_v31, 6.0  ;;  %v280_v42 = vmin.f32 %v248_v32, 6.0  ;;  %v167_v45 = vpop.f32.mrb[14].mxu0  ;;  %v215_v46 = vpop.f32.mrb[14].mxu1 }
 0x114   :  { %v363_v39 = vadd.f32 -1.1, %v263_v29  ;;  %v379_v40 = vadd.f32 -1.1, %v279_v30  ;;  %326 = vst [vmem:[%s707_s2 + $0x50] sm:$0xff] %v362_v35  ;;  %342 = vst [vmem:[%s707_s2 + $0xd0] sm:$0xff] %v378_v36 }
 0x115   :  { %v265_v43 = vmin.f32 %v233_v37, 6.0  ;;  %v281_v44 = vmin.f32 %v249_v38, 6.0  ;;  %v364_v47 = vadd.f32 -1.1, %v264_v41  ;;  %v380_v48 = vadd.f32 -1.1, %v280_v42 }
 0x116   :  { %327 = vst [vmem:[%s707_s2 + $0x58] sm:$0xff] %v363_v39  ;;  %343 = vst [vmem:[%s707_s2 + $0xd8] sm:$0xff] %v379_v40  ;;  %v234_v49 = vmax.f32 %v167_v45, 0.0  ;;  %v250_v50 = vmax.f32 %v215_v46, 0.0  ;;  %v169_v53 = vpop.f32.mrb[15].mxu0  ;;  %v217_v54 = vpop.f32.mrb[15].mxu1 }
 0x117   :  { %v365_v51 = vadd.f32 -1.1, %v265_v43  ;;  %v381_v52 = vadd.f32 -1.1, %v281_v44  ;;  %328 = vst [vmem:[%s707_s2 + $0x60] sm:$0xff] %v364_v47  ;;  %344 = vst [vmem:[%s707_s2 + $0xe0] sm:$0xff] %v380_v48 }
 0x118   :  { %v266_v55 = vmin.f32 %v234_v49, 6.0  ;;  %v282_v56 = vmin.f32 %v250_v50, 6.0  ;;  %v235_v57 = vmax.f32 %v169_v53, 0.0  ;;  %v251_v58 = vmax.f32 %v217_v54, 0.0 }
 0x119   :  { %329 = vst [vmem:[%s707_s2 + $0x68] sm:$0xff] %v365_v51  ;;  %345 = vst [vmem:[%s707_s2 + $0xe8] sm:$0xff] %v381_v52 }
 0x11a   :  { %v366_v59 = vadd.f32 -1.1, %v266_v55  ;;  %v382_v60 = vadd.f32 -1.1, %v282_v56  ;;  %v267_v61 = vmin.f32 %v235_v57, 6.0  ;;  %v283_v62 = vmin.f32 %v251_v58, 6.0 }
 0x11c   :  { %330 = vst [vmem:[%s707_s2 + $0x70] sm:$0xff] %v366_v59  ;;  %346 = vst [vmem:[%s707_s2 + $0xf0] sm:$0xff] %v382_v60  ;;  %v367_v63 = vadd.f32 -1.1, %v267_v61  ;;  %v383_v0 = vadd.f32 -1.1, %v283_v62 }
 0x11e   :  { %331 = vst [vmem:[%s707_s2 + $0x78] sm:$0xff] %v367_v63  ;;  %347 = vst [vmem:[%s707_s2 + $0xf8] sm:$0xff] %v383_v0 }

</bundles_post_ra>
